<compile_context>
chip_gen: v7x
topology: tpu7x:2x2x1
jax: 0.10.0
libtpu: 0.0.40
codegen_flags: <defaults>
</compile_context>

<pallas_src>
import functools
import math

import jax
import jax.numpy as jnp
from jax.experimental import pallas as pl
from jax.experimental.pallas import tpu as pltpu


def _bce_terms(x, y, w_col):
    """Per-element weighted BCE terms for one (T, D) tile (all f32)."""
    log_x = jnp.maximum(jnp.log(x), -100.0)       # PyTorch clamps log at -100
    log_1mx = jnp.maximum(jnp.log1p(-x), -100.0)  # log(1 - x), clamped
    return -w_col * (y * log_x + (1.0 - y) * log_1mx)


def _bce_reduce_kernel(x_ref, y_ref, w_ref, out_ref, acc_ref, *, inv_scale):
    """Grid over row tiles; running sum kept in a VMEM (1,1) scratch."""
    pid = pl.program_id(0)

    @pl.when(pid == 0)
    def _():
        acc_ref[...] = jnp.zeros_like(acc_ref)

    x = x_ref[...].astype(jnp.float32)            # (T, D)
    y = y_ref[...].astype(jnp.float32)            # (T, D)
    w = w_ref[...].astype(jnp.float32)            # (T, 1) — 0 on padded rows
    loss = _bce_terms(x, y, w)
    acc_ref[...] += jnp.sum(loss)                 # on-chip partial sum

    @pl.when(pid == pl.num_programs(0) - 1)
    def _():
        # multiply by a precomputed constant instead of dividing at finalize
        out_ref[...] = acc_ref[...] * inv_scale


def _bce_elementwise_kernel(x_ref, y_ref, w_ref, out_ref):
    """Grid over row tiles; lane-dense (T, D) elementwise output."""
    x = x_ref[...].astype(jnp.float32)
    y = y_ref[...].astype(jnp.float32)
    w = w_ref[...].astype(jnp.float32)
    out_ref[...] = _bce_terms(x, y, w).astype(out_ref.dtype)


def bce_loss(input, target, weight=None, size_average=True, reduce=True,
             max_tile_n=1024):
    """JAX/Pallas equivalent of torch.nn.BCELoss forward."""
    orig_shape = input.shape
    assert target.shape == orig_shape
    n = int(orig_shape[0])
    d = int(math.prod(orig_shape[1:])) if len(orig_shape) > 1 else 1

    x2 = input.reshape(n, d)
    y2 = target.reshape(n, d)
    if weight is None:
        w2 = jnp.ones((n, 1), jnp.float32)
    else:
        w2 = weight.reshape(n, 1).astype(jnp.float32)

    # ---- tile selection: biggest row tile that keeps the double-buffered
    # working set under a conservative VMEM budget (safe on v5e/v6e/v7x). ----
    itemsize = x2.dtype.itemsize
    sublane = 16 if itemsize == 2 else 8          # bf16 needs 16-row sublane tiles
    per_row_bytes = 2 * 2 * d * itemsize + 2 * 4  # x,y double-buffered + weight col
    if not reduce:
        per_row_bytes += 2 * d * 4                # f32 elementwise output, 2 buffers
    budget = 16 * 1024 * 1024
    tile_n = max(sublane, min(max_tile_n, budget // max(per_row_bytes, 1)))
    tile_n = (tile_n // sublane) * sublane
    n_round = ((n + sublane - 1) // sublane) * sublane
    tile_n = min(tile_n, n_round)

    grid_n = pl.cdiv(n, tile_n)
    n_pad = grid_n * tile_n

    if n_pad != n:
        pad = n_pad - n
        # Padded rows: x=0.5 (finite logs), y=0, weight=0 -> zero contribution.
        x2 = jnp.concatenate([x2, jnp.full((pad, d), 0.5, x2.dtype)], axis=0)
        y2 = jnp.concatenate([y2, jnp.zeros((pad, d), y2.dtype)], axis=0)
        w2 = jnp.concatenate([w2, jnp.zeros((pad, 1), w2.dtype)], axis=0)

    in_specs = [
        pl.BlockSpec((tile_n, d), lambda i: (i, 0)),
        pl.BlockSpec((tile_n, d), lambda i: (i, 0)),
        pl.BlockSpec((tile_n, 1), lambda i: (i, 0)),
    ]
    vmem_limit = int(min(max(per_row_bytes * tile_n * 2 + (2 << 20), 16 << 20),
                         48 << 20))

    if reduce:
        inv_scale = (1.0 / float(n * d)) if size_average else 1.0
        kernel = functools.partial(_bce_reduce_kernel, inv_scale=inv_scale)
        out = pl.pallas_call(
            kernel,
            out_shape=jax.ShapeDtypeStruct((1, 1), jnp.float32),
            grid_spec=pltpu.PrefetchScalarGridSpec(
                num_scalar_prefetch=0,
                grid=(grid_n,),
                in_specs=in_specs,
                out_specs=pl.BlockSpec((1, 1), lambda i: (0, 0)),
                scratch_shapes=[pltpu.VMEM((1, 1), jnp.float32)],
            ),
            compiler_params=pltpu.CompilerParams(
                dimension_semantics=("arbitrary",),      # accumulator axis
                vmem_limit_bytes=vmem_limit),
        )(x2, y2, w2)
        return out[0, 0]

    out = pl.pallas_call(
        _bce_elementwise_kernel,
        out_shape=jax.ShapeDtypeStruct((n_pad, d), jnp.float32),
        grid_spec=pltpu.PrefetchScalarGridSpec(
            num_scalar_prefetch=0,
            grid=(grid_n,),
            in_specs=in_specs,
            out_specs=pl.BlockSpec((tile_n, d), lambda i: (i, 0)),
        ),
        compiler_params=pltpu.CompilerParams(
            dimension_semantics=("parallel",),           # rows are independent
            vmem_limit_bytes=vmem_limit),
    )(x2, y2, w2)
    return out[:n].reshape(orig_shape)


def _reference(x, y, weight=None, size_average=True, reduce=True):
    xf = x.astype(jnp.float32)
    yf = y.astype(jnp.float32)
    log_x = jnp.maximum(jnp.log(xf), -100.0)
    log_1mx = jnp.maximum(jnp.log1p(-xf), -100.0)
    loss = -(yf * log_x + (1.0 - yf) * log_1mx)
    if weight is not None:
        wshape = (x.shape[0],) + (1,) * (x.ndim - 1)
        loss = loss * weight.reshape(wshape).astype(jnp.float32)
    if not reduce:
        return loss
    return jnp.mean(loss) if size_average else jnp.sum(loss)


if __name__ == "__main__":
    key = jax.random.PRNGKey(0)
    k1, k2, k3 = jax.random.split(key, 3)

    # N deliberately not a multiple of the tile -> exercises padding/masking;
    # max_tile_n=64 forces a multi-step grid (accumulator + pipelined DMA path).
    N, D = 160, 128
    logits = jax.random.normal(k1, (N, D), dtype=jnp.float32)
    x = jax.nn.sigmoid(logits)                               # probabilities in (0, 1)
    y = jax.random.bernoulli(k2, 0.5, (N, D)).astype(jnp.float32)
    w = jax.random.uniform(k3, (N,), dtype=jnp.float32)      # per-batch weights

    # default: size_average=True, reduce=True, no weight -> scalar mean
    loss_mean = bce_loss(x, y, max_tile_n=64)
    jax.block_until_ready(loss_mean)

    # weighted sum (size_average=False)
    loss_sum_w = bce_loss(x, y, weight=w, size_average=False, max_tile_n=64)
    jax.block_until_ready(loss_sum_w)

    # per-element losses (reduce=False), weighted
    per_elem = bce_loss(x, y, weight=w, reduce=False, max_tile_n=64)
    jax.block_until_ready(per_elem)

    # sanity checks against plain-JAX reference
    ref_mean = _reference(x, y)
    ref_sum_w = _reference(x, y, weight=w, size_average=False)
    ref_elem = _reference(x, y, weight=w, reduce=False)
    assert jnp.allclose(loss_mean, ref_mean, rtol=1e-5, atol=1e-5), (loss_mean, ref_mean)
    assert jnp.allclose(loss_sum_w, ref_sum_w, rtol=1e-4, atol=1e-3), (loss_sum_w, ref_sum_w)
    assert jnp.allclose(per_elem, ref_elem, rtol=1e-5, atol=1e-5)

    print("KERNEL_OK")
</pallas_src>

<mosaic_0001>
module attributes {stable_mosaic.version = 11 : i64} {
  func.func @_bce_reduce_kernel(%arg0: i32, %arg1: memref<64x128xf32, #tpu.memory_space<vmem>>, %arg2: memref<64x128xf32, #tpu.memory_space<vmem>>, %arg3: memref<64x1xf32, #tpu.memory_space<vmem>>, %arg4: memref<1x1xf32, #tpu.memory_space<vmem>>, %arg5: memref<1x1xf32, #tpu.memory_space<vmem>>) attributes {dimension_semantics = [#tpu.dimension_semantics<arbitrary>], iteration_bounds = array<i64: 3>, scalar_prefetch = 0 : i64, scratch_operands = 1 : i64, tpu.core_type = #tpu.core_type<tc>, window_params = [{transform_indices = @transform_0, window_bounds = array<i64: 64, 128>}, {transform_indices = @transform_1, window_bounds = array<i64: 64, 128>}, {transform_indices = @transform_2, window_bounds = array<i64: 64, 1>}, {pipeline_mode = #tpu.pipeline_mode<synchronous>, transform_indices = @transform_3, window_bounds = array<i64: 1, 1>}]} {
    %c0_i32 = arith.constant 0 : i32
    %0 = arith.cmpi eq, %arg0, %c0_i32 : i32
    %1 = arith.extui %0 : i1 to i32
    %c0_i32_0 = arith.constant 0 : i32
    %2 = arith.cmpi ne, %1, %c0_i32_0 : i32
    scf.if %2 {
      %cst_16 = arith.constant 0.000000e+00 : f32
      %34 = vector.broadcast %cst_16 : f32 to vector<1x1xf32>
      %c0_17 = arith.constant 0 : index
      %c0_18 = arith.constant 0 : index
      %35 = vector.load %arg5[%c0_17, %c0_18] : memref<1x1xf32, #tpu.memory_space<vmem>>, vector<1x1xf32>
      tpu.vector_store %arg5[%c0_17, %c0_18], %34 {strides = array<i32>} : memref<1x1xf32, #tpu.memory_space<vmem>>, vector<1x1xf32>,
    } else {
    }
    %c0 = arith.constant 0 : index
    %c0_1 = arith.constant 0 : index
    %3 = vector.load %arg1[%c0, %c0_1] : memref<64x128xf32, #tpu.memory_space<vmem>>, vector<64x128xf32>
    %c0_2 = arith.constant 0 : index
    %c0_3 = arith.constant 0 : index
    %4 = vector.load %arg2[%c0_2, %c0_3] : memref<64x128xf32, #tpu.memory_space<vmem>>, vector<64x128xf32>
    %c0_4 = arith.constant 0 : index
    %c0_5 = arith.constant 0 : index
    %5 = vector.load %arg3[%c0_4, %c0_5] : memref<64x1xf32, #tpu.memory_space<vmem>>, vector<64x1xf32>
    %6 = math.log %3 : vector<64x128xf32>
    %cst = arith.constant -1.000000e+02 : f32
    %7 = vector.broadcast %cst : f32 to vector<64x128xf32>
    %8 = arith.maximumf %6, %7 : vector<64x128xf32>
    %cst_6 = arith.constant 0.000000e+00 : f32
    %9 = vector.broadcast %cst_6 : f32 to vector<64x128xf32>
    %10 = arith.subf %9, %3 : vector<64x128xf32>
    %11 = math.log1p %10 : vector<64x128xf32>
    %cst_7 = arith.constant -1.000000e+02 : f32
    %12 = vector.broadcast %cst_7 : f32 to vector<64x128xf32>
    %13 = arith.maximumf %11, %12 : vector<64x128xf32>
    %cst_8 = arith.constant 0.000000e+00 : f32
    %14 = vector.broadcast %cst_8 : f32 to vector<64x1xf32>
    %15 = arith.subf %14, %5 : vector<64x1xf32>
    %16 = arith.mulf %4, %8 : vector<64x128xf32>
    %cst_9 = arith.constant 1.000000e+00 : f32
    %17 = vector.broadcast %cst_9 : f32 to vector<64x128xf32>
    %18 = arith.subf %17, %4 : vector<64x128xf32>
    %19 = arith.mulf %18, %13 : vector<64x128xf32>
    %20 = arith.addf %16, %19 : vector<64x128xf32>
    %21 = vector.broadcast %15 : vector<64x1xf32> to vector<64x128xf32>
    %22 = arith.mulf %21, %20 : vector<64x128xf32>
    %c0_10 = arith.constant 0 : index
    %c0_11 = arith.constant 0 : index
    %23 = vector.load %arg5[%c0_10, %c0_11] : memref<1x1xf32, #tpu.memory_space<vmem>>, vector<1x1xf32>
    %24 = vector.shape_cast %22 : vector<64x128xf32> to vector<1x64x128xf32>
    %cst_12 = arith.constant dense<0.000000e+00> : vector<1xf32>
    %25 = vector.multi_reduction <add>, %24, %cst_12 [1, 2] : vector<1x64x128xf32> to vector<1xf32>
    %26 = vector.shape_cast %25 : vector<1xf32> to vector<1x1x1xf32>
    %27 = vector.extract %26[0, 0, 0] : f32 from vector<1x1x1xf32>
    %28 = vector.broadcast %27 : f32 to vector<1x1xf32>
    %29 = arith.addf %23, %28 : vector<1x1xf32>
    %c0_13 = arith.constant 0 : index
    %c0_14 = arith.constant 0 : index
    %30 = vector.load %arg5[%c0_13, %c0_14] : memref<1x1xf32, #tpu.memory_space<vmem>>, vector<1x1xf32>
    tpu.vector_store %arg5[%c0_13, %c0_14], %29 {strides = array<i32>} : memref<1x1xf32, #tpu.memory_space<vmem>>, vector<1x1xf32>,
    %c2_i32 = arith.constant 2 : i32
    %31 = arith.cmpi eq, %arg0, %c2_i32 : i32
    %32 = arith.extui %31 : i1 to i32
    %c0_i32_15 = arith.constant 0 : i32
    %33 = arith.cmpi ne, %32, %c0_i32_15 : i32
    scf.if %33 {
      %c0_16 = arith.constant 0 : index
      %c0_17 = arith.constant 0 : index
      %34 = vector.load %arg5[%c0_16, %c0_17] : memref<1x1xf32, #tpu.memory_space<vmem>>, vector<1x1xf32>
      %cst_18 = arith.constant 4.88281257E-5 : f32
      %35 = vector.broadcast %cst_18 : f32 to vector<1x1xf32>
      %36 = arith.mulf %34, %35 : vector<1x1xf32>
      %c0_19 = arith.constant 0 : index
      %c0_20 = arith.constant 0 : index
      %37 = vector.load %arg4[%c0_19, %c0_20] : memref<1x1xf32, #tpu.memory_space<vmem>>, vector<1x1xf32>
      tpu.vector_store %arg4[%c0_19, %c0_20], %36 {strides = array<i32>} : memref<1x1xf32, #tpu.memory_space<vmem>>, vector<1x1xf32>,
    } else {
    }
    return
  }
  func.func @transform_0(%arg0: i32) -> (i32, i32) {
    %c0_i32 = arith.constant 0 : i32
    %c0_i32_0 = arith.constant 0 : i32
    return %arg0, %c0_i32 : i32, i32
  }
  func.func @transform_1(%arg0: i32) -> (i32, i32) {
    %c0_i32 = arith.constant 0 : i32
    %c0_i32_0 = arith.constant 0 : i32
    return %arg0, %c0_i32 : i32, i32
  }
  func.func @transform_2(%arg0: i32) -> (i32, i32) {
    %c0_i32 = arith.constant 0 : i32
    %c0_i32_0 = arith.constant 0 : i32
    return %arg0, %c0_i32 : i32, i32
  }
  func.func @transform_3(%arg0: i32) -> (i32, i32) {
    %c0_i32 = arith.constant 0 : i32
    %c0_i32_0 = arith.constant 0 : i32
    %c0_i32_1 = arith.constant 0 : i32
    return %c0_i32, %c0_i32_0 : i32, i32
  }
}

</mosaic_0001>

<bundles_post_ra>
// kernel: tpu_custom_call.1
= control target key start
LH: loop header
LB: loop body
LE: loop exit
PB: predicated region body
PF: predicated region fallthrough
CT: control target
= control target key end

     0   :  { %8 = vsyncpa [#allocation4], 0  ;;  %s1070_s0 = inlined_call_operand.vmem [shape: f32[192,128], index: 0, kind: input, shape index: {}]   ;;  %s1071_s1 = inlined_call_operand.hbm [shape: f32[192,128], index: 1, kind: input, shape index: {}]   ;;  %s1072_s2 = inlined_call_operand.vmem [shape: f32[192,1], index: 2, kind: input, shape index: {}]   ;;  %s1073_s3 = inlined_call_operand.hbm [shape: f32[1,1], index: 3, kind: output, shape index: {}]  }
   0x1   :  { %10 = vsyncpa [#allocation4 + $0x1], 0 }
   0x2   :  { %11 = vsyncpa [#allocation5], 0  ;;  %s788_s12 = smov 0   ;;  %s790_s13 = smov 0  }
   0x3   :  { %s792_s14 = smov 0   ;;  %s794_s15 = smov 0  }
   0x4 LB: > { %s807_s16 = sadd.s32 4294967295, %s760_s15   ;;  %s810_s17 = sadd.s32 1, %s760_s15   ;;  %s760_s15 = sphi %s794_s15, %s1096_s15   ;;  %s756_s14 = sphi %s792_s14, %s1095_s14   ;;  %s752_s13 = sphi %s790_s13, %s1094_s13   ;;  %s748_s12 = sphi %s788_s12, %s1093_s12  }
   0x5   : > { %s47_s18 = ssub.s32 %s760_s15, %s810_s17  ;;  %s50_s19 = sadd.s32 1, %s756_s14 }
   0x6   : > { %p48_p0 = scmp.eq.s32.totalorder %s47_s18, 0  ;;  %p57_p1 = scmp.ne.s32.totalorder %s756_s14, %s752_s13 }
   0x7   : > { %p58_p2 = scmp.eq.s32.totalorder %s760_s15, 0  ;;  %p63_p3 = scmp.ne.s32.totalorder %s752_s13, %s748_s12 }
   0x8   : > { %s820_s20 = scalar_select %p48_p0, %s756_s14, %s50_s19  }
   0x9   : > { %p59_p4 = por %p58_p2, %p57_p1  ;;  %p64_p5 = scmp.eq.s32.totalorder %s807_s16, 0 }
   0xa   : > { %p592_p6 = scmp.lt.s32.totalorder %s760_s15, 3  ;;  %s143_s22 = sand.u32 1, %s756_s14  }
   0xb   : > { %p824_p7 = por %p64_p5, %p63_p3  ;;  %s564_s23 = sshll.u32 %s143_s22, 6 }
   0xc   : > { %s579_s24 = sshll.u32 %s760_s15, 10  ;;  %s147_s28 = scalar_lea.vmem [#allocation3], %s564_s23 }
   0xd   : > { %s833_s27 = scalar_lea.hbm %s1071_s1, %s579_s24  ;;  %s154_s29 = sshll.u32 %s147_s28, 4  ;;  %s835_s29 = int_to_ptr.vmem [resolvable:$true] %s154_s29 }
   0xe   : > { %p837_p8 = pnand %p592_p6, %p59_p4  ;;  %s842_s4 = scalar_lea.sflag [#allocation4], %s143_s22 }
   0xf   : > { %s666_s5 = scalar_lea.hbm %s833_s27, 1024  ;;  %s671_s8 = scalar_lea.hbm %s1071_s1, 3072 }
  0x10   : > { %p667_p10 = scmp.ne.s32.totalorder %s833_s27, %s666_s5  ;;  %p668_p11 = pneg %p837_p8 }
  0x11   : > { %p672_p0 = scmp.lt.u32.totalorder %s833_s27, %s1071_s1  ;;  %p673_p1 = scmp.lt.u32.totalorder %s671_s8, %s666_s5 }
  0x12   : > { %p669_p12 = pnand %p668_p11, %p667_p10  ;;  %p675_p3 = scmp.lt.u32.totalorder %s666_s5, %s833_s27 }
  0x13   : > { %p674_p2 = por %p673_p1, %p672_p0 }
  0x14   : > { %p670_p13 = pneg %p669_p12 }
  0x15   : > { %p676_p4 = por %p675_p3, %p674_p2 }
  0x17   : > { %p677_p5 = pnand %p676_p4, %p670_p13 }
  0x19   : > { %680 = shalt.err (!%p677_p5)
}
  0x1a   : > { %s681_s11 = scalar_lea.vmem %s835_s29, 1024  ;;  %s762_s12 = smov [#allocation3]  }
  0x1b   : > { %p682_p6 = scmp.ne.s32.totalorder %s835_s29, %s681_s11  ;;  %s686_s18 = sshll.u32 %s762_s12, 4  ;;  %s687_s18 = int_to_ptr.vmem [resolvable:$false] %s686_s18 }
  0x1c   : > { %s688_s19 = scalar_lea.vmem %s687_s18, 2048  ;;  %p689_p9 = scmp.lt.s32.totalorder %s835_s29, %s687_s18 }
  0x1d   : > { %p684_p10 = pnand %p682_p6, %p668_p11  ;;  %p690_p0 = scmp.lt.s32.totalorder %s688_s19, %s681_s11 }
  0x1f   : > { %p685_p12 = pneg %p684_p10  ;;  %p691_p1 = por %p690_p0, %p689_p9 }
  0x21   : > { %p692_p2 = pnand %p691_p1, %p685_p12 }
  0x23   : > { %695 = shalt.err (!%p692_p2)
}
  0x24   : > { %s763_s22 = smov 128   ;;  %s764_s23 = smov 8  }
  0x25   : > { %591 = dma.hbm_to_vmem [thread:$0]  (!%p837_p8), %s833_s27, 1024, %s835_s29, %s842_s4, %s763_s22, %s763_s22, %s764_s23  }
  0x26   : > { %p171_p11 = scmp.lt.s32.totalorder %s760_s15, 4  ;;  %p1076_p13 = scmp.ge.s32.totalorder %s760_s15, 1 }
  0x28   : > { %p172_p3 = pnand %p1076_p13, %p171_p11 }
  0x29   : > { %s177_s24 = sand.u32 (!%p172_p3), 1, %s752_s13  }
  0x2a   : > { %175 = sbr.rel (%p172_p3) target bundleno = 453 (0x1c5), region = 32  ;;  %s568_s25 = sshll.u32 (!%p172_p3), %s177_s24, 6 }
  0x2b   : > { %s178_s26 = scalar_lea.sflag (!%p172_p3), [#allocation4], %s177_s24  ;;  %s874_s28 = scalar_lea.vmem (!%p172_p3), [#allocation3], %s568_s25 }
  0x31   : > { %739 = dma.done.wait (%p824_p7), %s178_s26, 1024  }
  0x32   : > { %741 = vsyncadd (%p824_p7), %s178_s26, 4294966272  ;;  %s569_s5 = sshll.u32 %s807_s16, 3  ;;  %p573_p8 = scmp.ne.s32.totalorder %s807_s16, 0 }
  0x33   : > { %p210_p9 = scmp.lt.s32.totalorder %s569_s5, 23  ;;  %vm226_vm0 = vcmask (!%p573_p8), 0   ;;  %v765_v0 = vmov (!%p573_p8), 0.0  }
  0x34   : > { %225 = sbr.rel (%p573_p8) target bundleno = 59 (0x3b), region = 40  ;;  %227 = vst.msk [vmem:[#allocation2] sm:$0x1] (!%p573_p8), %vm226_vm0, %v765_v0 }
  0x35   : > { %s1098_s5 = smov (!%p210_p9, %s569_s5), 23 }
  0x36   : > { %s570_s27 = sshll.u32 %s1098_s5, 3 }
  0x37   : > { %s884_s30 = scalar_lea.vmem %s1070_s0, %s570_s27  ;;  %s220_s7 = scalar_lea.vmem %s1072_s2, %s570_s27 }
  0x3b PF: > { %v246_v1 = vld [vmem:[%s220_s7 + $0x10] sm:$0xff]  ;;  %v244_v2 = vld [vmem:[%s220_s7] sm:$0xff]  ;;  %v247_v3 = vld [vmem:[%s220_s7 + $0x18] sm:$0xff]  ;;  %v766_v4 = vmov 0   ;;  %vm471_vm9 = vcmask 0   ;;  %p574_p7 = scmp.ne.s32.totalorder %s807_s16, 2 }
  0x3c   : > { %633 = vset.pattern.permute.xlu1 %v766_v4  ;;  %632 = vset.pattern.permute.xlu0 %v766_v4  ;;  %v366_v5 = vsub.f32 0.0, %v246_v1  ;;  %v364_v6 = vsub.f32 0.0, %v244_v2  ;;  %v245_v7 = vld [vmem:[%s220_s7 + $0x8] sm:$0xff]  ;;  %v367_v8 = vsub.f32 0.0, %v247_v3  ;;  %v248_v11 = vld [vmem:[%s220_s7 + $0x20] sm:$0xff]  ;;  %v251_v14 = vld [vmem:[%s220_s7 + $0x38] sm:$0xff] }
  0x3d   : > { %v365_v9 = vsub.f32 0.0, %v245_v7  ;;  %v249_v10 = vld [vmem:[%s220_s7 + $0x28] sm:$0xff]  ;;  %v368_v13 = vsub.f32 0.0, %v248_v11  ;;  %v250_v15 = vld [vmem:[%s220_s7 + $0x30] sm:$0xff]  ;;  %v371_v16 = vsub.f32 0.0, %v251_v14  ;;  %v228_v18 = vld [vmem:[%s884_s30] sm:$0xff] }
  0x3e   : > { %416 = vperm.xlu1 %633, %v366_v5   ;;  %406 = vperm.xlu0 %632, %v364_v6   ;;  %v369_v12 = vsub.f32 0.0, %v249_v10  ;;  %v370_v17 = vsub.f32 0.0, %v250_v15  ;;  %v229_v19 = vld [vmem:[%s884_s30 + $0x8] sm:$0xff]  ;;  %v230_v20 = vld [vmem:[%s884_s30 + $0x10] sm:$0xff]  ;;  %v276_v21 = vsub.f32 0.0, %v228_v18  ;;  %v231_v22 = vld [vmem:[%s884_s30 + $0x18] sm:$0xff] }
  0x3f   : > { %v894_v23 = vsub.f32 0.0, %v229_v19  ;;  %v278_v24 = vsub.f32 0.0, %v230_v20  ;;  %v232_v25 = vld [vmem:[%s884_s30 + $0x20] sm:$0xff]  ;;  %v897_v27 = vsub.f32 0.0, %v231_v22  ;;  %634 = vlog2.f32 %v230_v20  ;;  %v233_v29 = vld [vmem:[%s884_s30 + $0x28] sm:$0xff]  ;;  %v907_v34 = vld [vmem:[%s884_s30 + $0x30] sm:$0xff] }
  0x40   : > { %v284_v26 = vadd.f32 1.0, %v276_v21  ;;  %636 = vlog2.f32 %v228_v18  ;;  %v901_v31 = vsub.f32 0.0, %v232_v25  ;;  %v904_v33 = vsub.f32 0.0, %v233_v29  ;;  %v911_v38 = vld [vmem:[%s884_s30 + $0x38] sm:$0xff]  ;;  %v920_v42 = vld [vmem:[%s874_s28] sm:$0xff]  ;;  %v947_v63 = vld [vmem:[%s874_s28 + $0x8] sm:$0xff] }
  0x41   : > { %v293_v28 = vadd.f32 1.0, %v894_v23  ;;  %v302_v30 = vadd.f32 1.0, %v278_v24  ;;  %638 = vlog2.f32 %v231_v22  ;;  %v311_v32 = vadd.f32 1.0, %v897_v27  ;;  %v914_v39 = vld [vmem:[%s874_s28 + $0x10] sm:$0xff]  ;;  %v923_v44 = vld [vmem:[%s874_s28 + $0x18] sm:$0xff]  ;;  %v951_v1 = vld [vmem:[%s874_s28 + $0x28] sm:$0xff] }
  0x42   : > { %421 = vperm.xlu1 %633, %v367_v8   ;;  %411 = vperm.xlu0 %632, %v365_v9   ;;  %640 = vlog2.f32 %v284_v26  ;;  %v305_v35 = vmul.f32 -0.5, %v278_v24  ;;  %v287_v36 = vmul.f32 -0.5, %v276_v21  ;;  %v320_v37 = vadd.f32 1.0, %v901_v31 }
  0x43   : > { %642 = vlog2.f32 %v293_v28  ;;  %v308_v40 = vand.u32 2147483647, %v278_v24  ;;  %v917_v41 = vsub.f32 0.0, %v907_v34  ;;  %v290_v43 = vand.u32 2147483647, %v276_v21 }
  0x44   : > { %644 = vlog2.f32 %v302_v30  ;;  %v314_v45 = vmul.f32 -0.5, %v897_v27  ;;  %v329_v46 = vadd.f32 1.0, %v904_v33  ;;  %v306_v47 = vadd.f32 1.0, %v305_v35 }
  0x45   : > { %646 = vlog2.f32 %v229_v19  ;;  %v928_v48 = vsub.f32 0.0, %v911_v38  ;;  %v288_v49 = vadd.f32 1.0, %v287_v36  ;;  %v296_v50 = vmul.f32 -0.5, %v894_v23 }
  0x46   : > { %431 = vperm.xlu1 %633, %v369_v12   ;;  %426 = vperm.xlu0 %632, %v368_v13   ;;  %648 = vlog2.f32 %v311_v32  ;;  %v382_v52 = vsub.f32 1.0, %v914_v39  ;;  %v380_v53 = vsub.f32 1.0, %v920_v42  ;;  %v383_v54 = vsub.f32 1.0, %v923_v44 }
  0x47   : > { %650 = vlog2.f32 %v320_v37  ;;  %v338_v55 = vadd.f32 1.0, %v917_v41  ;;  %vm935_vm1 = vcmp.lt.f32.partialorder %v308_v40, 0.0004427343  ;;  %vm939_vm2 = vcmp.lt.f32.partialorder %v290_v43, 0.0004427343 }
  0x48   : > { %v315_v59 = vadd.f32 1.0, %v314_v45  ;;  %v317_v60 = vand.u32 2147483647, %v897_v27  ;;  %652 = vlog2.f32 %v329_v46  ;;  %v944_v62 = vmul.f32 %v306_v47, %v278_v24 }
  0x49   : > { %v635_v51 = vpop.eup %634  ;;  %v299_v0 = vand.u32 2147483647, %v894_v23  ;;  %654 = vlog2.f32 %v232_v25  ;;  %v347_v2 = vadd.f32 1.0, %v928_v48  ;;  %v289_v4 = vmul.f32 %v288_v49, %v276_v21  ;;  %v970_v25 = vld [vmem:[%s874_s28 + $0x20] sm:$0xff] }
  0x4a   : > { %441 = vperm.xlu1 %633, %v371_v16   ;;  %436 = vperm.xlu0 %632, %v370_v17   ;;  %v637_v56 = vpop.eup %636  ;;  %v297_v5 = vadd.f32 1.0, %v296_v50  ;;  %656 = vlog2.f32 %v233_v29  ;;  %v332_v6 = vmul.f32 -0.5, %v904_v33  ;;  %v257_v8 = vmul.f32 0.6931472, %v635_v51 }
  0x4b   : > { %v639_v61 = vpop.eup %638  ;;  %v335_v9 = vand.u32 2147483647, %v904_v33  ;;  %v323_v10 = vmul.f32 -0.5, %v901_v31  ;;  %658 = vlog2.f32 %v338_v55  ;;  %v316_v12 = vmul.f32 %v315_v59, %v897_v27 }
  0x4c   : > { %v641_v3 = vpop.eup %640  ;;  %vm958_vm3 = vcmp.lt.f32.partialorder %v317_v60, 0.0004427343  ;;  %v381_v14 = vsub.f32 1.0, %v947_v63  ;;  %v385_v15 = vsub.f32 1.0, %v951_v1  ;;  %v253_v17 = vmul.f32 0.6931472, %v637_v56 }
  0x4d   : > { %v643_v7 = vpop.eup %642  ;;  %v286_v18 = vmul.f32 0.6931472, %v641_v3  ;;  %vm964_vm4 = vcmp.lt.f32.partialorder %v299_v0, 0.0004427343  ;;  %660 = vlog2.f32 %v347_v2  ;;  %v298_v22 = vmul.f32 %v297_v5, %v894_v23 }
  0x4e   : > { %v645_v11 = vpop.eup %644  ;;  %v295_v21 = vmul.f32 0.6931472, %v643_v7  ;;  %v333_v24 = vadd.f32 1.0, %v332_v6  ;;  %662 = vlog2.f32 %v907_v34  ;;  %v270_v26 = vmax.f32 %v257_v8, -100.0 }
  0x4f   : > { %v647_v16 = vpop.eup %646  ;;  %v304_v27 = vmul.f32 0.6931472, %v645_v11  ;;  %vm973_vm5 = vcmp.lt.f32.partialorder %v335_v9, 0.0004427343  ;;  %v324_v29 = vadd.f32 1.0, %v323_v10  ;;  %664 = vlog2.f32 %v911_v38 }
  0x50   : > { %v649_v20 = vpop.eup %648  ;;  %v255_v32 = vmul.f32 0.6931472, %v647_v16  ;;  %v326_v35 = vand.u32 2147483647, %v901_v31  ;;  %v341_v23 = vmul.f32 -0.5, %v917_v41  ;;  %v268_v36 = vmax.f32 %v253_v17, -100.0 }
  0x51   : > { %v651_v30 = vpop.eup %650  ;;  %v292_v37 = vsel %vm939_vm2, %v289_v4, %v286_v18  ;;  %v259_v34 = vmul.f32 0.6931472, %v639_v61  ;;  %v313_v40 = vmul.f32 0.6931472, %v649_v20  ;;  %v301_v45 = vsel %vm964_vm4, %v298_v22, %v295_v21 }
  0x52   : > { %v653_v43 = vpop.eup %652  ;;  %v334_v46 = vmul.f32 %v333_v24, %v904_v33  ;;  %v384_v47 = vsub.f32 1.0, %v970_v25  ;;  %v350_v49 = vmul.f32 -0.5, %v928_v48  ;;  %v310_v38 = vsel %vm935_vm1, %v944_v62, %v304_v27 }
  0x53   : > { %v655_v50 = vpop.eup %654  ;;  %v374_v51 = vmul.f32 %v270_v26, %v914_v39  ;;  %v322_v55 = vmul.f32 0.6931472, %v651_v30  ;;  %v325_v56 = vmul.f32 %v324_v29, %v901_v31  ;;  %v356_v59 = vmax.f32 %v292_v37, -100.0  ;;  %v243_v37 = vld [vmem:[%s874_s28 + $0x38] sm:$0xff] }
  0x54   : > { %v657_v58 = vpop.eup %656  ;;  %v269_v60 = vmax.f32 %v255_v32, -100.0  ;;  %vm992_vm6 = vcmp.lt.f32.partialorder %v326_v35, 0.0004427343  ;;  %v342_v33 = vadd.f32 1.0, %v341_v23  ;;  %v319_v2 = vsel %vm958_vm3, %v316_v12, %v313_v40 }
  0x55   : > { %v659_v0 = vpop.eup %658  ;;  %v357_v3 = vmax.f32 %v301_v45, -100.0  ;;  %v331_v57 = vmul.f32 0.6931472, %v653_v43  ;;  %v344_v62 = vand.u32 2147483647, %v917_v41  ;;  %v372_v4 = vmul.f32 %v268_v36, %v920_v42  ;;  %v242_v36 = vld [vmem:[%s874_s28 + $0x30] sm:$0xff] }
  0x56   : > { %v271_v5 = vmax.f32 %v259_v34, -100.0  ;;  %v261_v31 = vmul.f32 0.6931472, %v655_v50  ;;  %v351_v6 = vadd.f32 1.0, %v350_v49  ;;  %v358_v8 = vmax.f32 %v310_v38, -100.0 }
  0x57   : > { %v661_v7 = vpop.eup %660  ;;  %v263_v9 = vmul.f32 0.6931472, %v657_v58  ;;  %v328_v10 = vsel %vm992_vm6, %v325_v56, %v322_v55  ;;  %v353_v11 = vand.u32 2147483647, %v928_v48  ;;  %v388_v12 = vmul.f32 %v380_v53, %v356_v59 }
  0x58   : > { %v663_v16 = vpop.eup %662  ;;  %v359_v13 = vmax.f32 %v319_v2, -100.0  ;;  %v340_v17 = vmul.f32 0.6931472, %v659_v0  ;;  %v343_v18 = vmul.f32 %v342_v33, %v917_v41  ;;  %v373_v19 = vmul.f32 %v269_v60, %v947_v63 }
  0x59   : > { %v389_v20 = vmul.f32 %v381_v14, %v357_v3  ;;  %v337_v21 = vsel %vm973_vm5, %v334_v46, %v331_v57  ;;  %vm1009_vm7 = vcmp.lt.f32.partialorder %v344_v62, 0.0004427343  ;;  %v665_v24 = vpop.eup %664  ;;  %v272_v26 = vmax.f32 %v261_v31, -100.0 }
  0x5a   : > { %v360_v27 = vmax.f32 %v328_v10, -100.0  ;;  %v349_v42 = vmul.f32 0.6931472, %v661_v7  ;;  %v352_v53 = vmul.f32 %v351_v6, %v928_v48  ;;  %v390_v41 = vmul.f32 %v382_v52, %v358_v8 }
  0x5b   : > { %v375_v63 = vmul.f32 %v271_v5, %v923_v44  ;;  %vm1017_vm8 = vcmp.lt.f32.partialorder %v353_v11, 0.0004427343  ;;  %v265_v28 = vmul.f32 0.6931472, %v663_v16  ;;  %v391_v32 = vmul.f32 %v383_v54, %v359_v13 }
  0x5c   : > { %v273_v35 = vmax.f32 %v263_v9, -100.0  ;;  %v361_v23 = vmax.f32 %v337_v21, -100.0  ;;  %v346_v48 = vsel %vm1009_vm7, %v343_v18, %v340_v17  ;;  %v396_v39 = vadd.f32 %v388_v12, %v372_v4 }
  0x5d   : > { %v397_v52 = vadd.f32 %v389_v20, %v373_v19  ;;  %v267_v34 = vmul.f32 0.6931472, %v665_v24  ;;  %v376_v40 = vmul.f32 %v272_v26, %v970_v25  ;;  %v392_v43 = vmul.f32 %v384_v47, %v360_v27 }
  0x5e   : > { %v355_v45 = vsel %vm1017_vm8, %v352_v53, %v349_v42  ;;  %v398_v46 = vadd.f32 %v390_v41, %v374_v51  ;;  %v274_v49 = vmax.f32 %v265_v28, -100.0  ;;  %v362_v44 = vmax.f32 %v346_v48, -100.0  ;;  %v452_v41 = vld [vmem:[#allocation2] sm:$0x1] }
  0x5f   : > { %v386_v54 = vsub.f32 1.0, %v242_v36  ;;  %v399_v38 = vadd.f32 %v391_v32, %v375_v63  ;;  %v377_v56 = vmul.f32 %v273_v35, %v951_v1  ;;  %v393_v58 = vmul.f32 %v385_v15, %v361_v23 }
  0x60   : > { %v387_v59 = vsub.f32 1.0, %v243_v37  ;;  %v275_v25 = vmax.f32 %v267_v34, -100.0  ;;  %v363_v47 = vmax.f32 %v355_v45, -100.0  ;;  %v400_v33 = vadd.f32 %v392_v43, %v376_v40 }
  0x61   : > { %v378_v51 = vmul.f32 %v274_v49, %v242_v36  ;;  %v394_v3 = vmul.f32 %v386_v54, %v362_v44  ;;  %v401_v62 = vadd.f32 %v393_v58, %v377_v56 }
  0x62   : > { %v379_v6 = vmul.f32 %v275_v25, %v243_v37  ;;  %v395_v7 = vmul.f32 %v387_v59, %v363_v47 }
  0x63   : > { %v402_v15 = vadd.f32 %v394_v3, %v378_v51 }
  0x64   : > { %v403_v16 = vadd.f32 %v395_v7, %v379_v6 }
  0xbd   : > { %v417_v29 = vpop.permute.xlu1 %416  ;;  %v407_v30 = vpop.permute.xlu0 %406 }
  0xbe   : > { %v444_v60 = vmul.f32 %v407_v30, %v396_v39  ;;  %v446_v0 = vmul.f32 %v417_v29, %v398_v46 }
  0xc1   : > { %v422_v50 = vpop.permute.xlu1 %421  ;;  %v412_v55 = vpop.permute.xlu0 %411 }
  0xc2   : > { %v445_v61 = vmul.f32 %v412_v55, %v397_v52  ;;  %v447_v5 = vmul.f32 %v422_v50, %v399_v38 }
  0xc4   : > { %v453_v2 = vadd.f32 %v445_v61, %v444_v60 }
  0xc5   : > { %v432_v57 = vpop.permute.xlu1 %431  ;;  %v427_v4 = vpop.permute.xlu0 %426 }
  0xc6   : > { %v454_v31 = vadd.f32 %v453_v2, %v446_v0  ;;  %v448_v8 = vmul.f32 %v427_v4, %v400_v33  ;;  %v449_v10 = vmul.f32 %v432_v57, %v401_v62 }
  0xc8   : > { %v455_v1 = vadd.f32 %v454_v31, %v447_v5 }
  0xc9   : > { %v437_v9 = vpop.permute.xlu0 %436  ;;  %v442_v12 = vpop.permute.xlu1 %441 }
  0xca   : > { %v456_v11 = vadd.f32 %v455_v1, %v448_v8  ;;  %v450_v13 = vmul.f32 %v437_v9, %v402_v15  ;;  %v451_v18 = vmul.f32 %v442_v12, %v403_v16 }
  0xcc   : > { %v457_v17 = vadd.f32 %v456_v11, %v449_v10 }
  0xce   : > { %v458_v19 = vadd.f32 %v457_v17, %v450_v13 }
  0xd0   : > { %v459_v20 = vadd.f32 %v458_v19, %v451_v18 }
  0xd2   : > { %460 = vadd.xlane.f32.xlu0 %v459_v20 }
 0x15f   : > { %v461_v21 = vpop.xlane.xlu0 %460 }
 0x160   : > { %v462_v22 = vrot.slane %v461_v21, 4 }
 0x162   : > { %v463_v24 = vadd.f32 %v462_v22, %v461_v21 }
 0x164   : > { %v464_v26 = vrot.slane %v463_v24, 2 }
 0x166   : > { %v465_v27 = vadd.f32 %v464_v26, %v463_v24 }
 0x168   : > { %v466_v42 = vrot.slane %v465_v27, 1 }
 0x16a   : > { %v467_v53 = vadd.f32 %v466_v42, %v465_v27 }
 0x16c   : > { %580 = vpush %v467_v53 }
 0x19b   : > { %476 = sbr.rel (%p574_p7) target bundleno = 428 (0x1ac), region = 44 }
 0x19d   : > { %s581_s21 = spop %580 }
 0x19e   : > { %v469_v63 = vstv %s581_s21 }
 0x19f   : > { %v470_v14 = vadd.f32 %v469_v63, %v452_v41 }
 0x1a1   : > { %472 = vst.msk [vmem:[#allocation2] sm:$0x1] %vm471_vm9, %v470_v14 }
 0x1a8   : > { %v477_v28 = vld [vmem:[#allocation2] sm:$0x1] }
 0x1a9   : > { %v478_v29 = vmul.f32 4.8828126e-05, %v477_v28 }
 0x1ab   : > { %479 = vst.msk [vmem:[#allocation6] sm:$0x1] %vm471_vm9, %v478_v29 }
 0x1ac PF: > { %p593_p4 = scmp.eq.s32.totalorder %s807_s16, 2  ;;  %s767_s8 = smov [#allocation6]  }
 0x1ad   : > { %s487_s9 = sshll.u32 %s767_s8, 4  ;;  %s488_s9 = int_to_ptr.vmem [resolvable:$true] %s487_s9 }
 0x1ae   : > { %s696_s10 = scalar_lea.vmem %s488_s9, 16  ;;  %s702_s11 = scalar_lea.vmem %s488_s9, 32 }
 0x1af   : > { %p697_p5 = scmp.ne.s32.totalorder %s488_s9, %s696_s10  ;;  %p703_p12 = scmp.lt.s32.totalorder %s488_s9, %s488_s9 }
 0x1b0   : > { %p704_p0 = scmp.lt.s32.totalorder %s702_s11, %s696_s10 }
 0x1b1   : > { %p698_p6 = pnand %p697_p5, %p593_p4 }
 0x1b2   : > { %p705_p1 = por %p704_p0, %p703_p12 }
 0x1b3   : > { %p699_p10 = pneg %p698_p6 }
 0x1b5   : > { %p706_p2 = pnand %p705_p1, %p699_p10 }
 0x1b7   : > { %709 = shalt.err (!%p706_p2)
}
 0x1b8   : > { %s710_s19 = scalar_lea.hbm %s1073_s3, 16 }
 0x1b9   : > { %p711_p11 = scmp.ne.s32.totalorder %s1073_s3, %s710_s19  ;;  %p716_p9 = scmp.lt.u32.totalorder %s710_s19, %s1073_s3 }
 0x1bb   : > { %p712_p13 = pnand %p711_p11, %p593_p4 }
 0x1bd   : > { %p713_p3 = pneg %p712_p13 }
 0x1bf   : > { %p718_p8 = pnand %p716_p9, %p713_p3 }
 0x1c1   : > { %721 = shalt.err (!%p718_p8)
}
 0x1c2   : > { %585 = dma.vmem_to_hbm [thread:$0]  (%p593_p4), %s488_s9, 16, %s1073_s3, [#allocation5]  }
 0x1c3   : > { %743 = dma.done.wait (%p593_p4), [#allocation5], 16  }
 0x1c4   : > { %745 = vsyncadd (%p593_p4), [#allocation5], 4294967280 }
 0x1c5 PF: > { %p14_p7 = scmp.ge.s32.totalorder %s810_s17, 5   ;;  %s1093_s12 = smov %s752_s13 }
 0x1c6   : > { %s1094_s13 = smov %s756_s14  ;;  %s1095_s14 = smov %s820_s20 }
 0x1c7   : > { %s1096_s15 = smov %s810_s17  ;;  %16 = sbr.rel (!%p14_p7) target bundleno = 4 (0x4), region = 83 }
 0x1ce   :  { %500 = vsyncpa [#allocation4], 1 }
 0x1cf   :  { %502 = vsyncpa [#allocation4 + $0x1], 1 }
 0x1d0   :  { %503 = vsyncpa [#allocation5], 1 }
 0x1d1   :  { %505 = vsyncpa [#allocation5 + $0x1], 1 }

</bundles_post_ra>
